<compile_context>
chip_gen: v7x
topology: tpu7x:2x2x1
jax: 0.10.0
libtpu: 0.0.40
codegen_flags: <defaults>
</compile_context>

<pallas_src>
import jax
import jax.numpy as jnp
from jax.experimental import pallas as pl
from jax.experimental.pallas import tpu as pltpu


def _round_up(a, b):
    return ((a + b - 1) // b) * b


def _sdist_tile(x, yT):
    """Squared Euclidean distances: x (tm, D), yT (D, tn) -> (tm, tn) f32."""
    D = x.shape[-1]
    if D == 1:
        d = x[:, 0:1] - yT[0:1, :]
        return d * d
    # ||x||^2 + ||y||^2 - 2 x.yT  : one lane broadcast each + one MXU matmul.
    xsq = jnp.sum(x * x, axis=-1, keepdims=True)           # (tm, 1)
    ysq = jnp.sum(yT * yT, axis=0, keepdims=True)          # (1, tn)
    acc = xsq + ysq - 2.0 * jnp.dot(x, yT, preferred_element_type=jnp.float32)
    # Cancellation can make acc slightly negative near zero distance -> clamp.
    return jnp.maximum(acc, 0.0)


def _rbf_fused_body(coeff_ref, logs2_ref, x_ref, yT_ref, o_ref):
    """K fused into the block: one grid step writes a (K, tm, tn) tile."""
    sdist = _sdist_tile(x_ref[...], yT_ref[...])            # lives in vregs
    K = o_ref.shape[0]
    for k in range(K):                                      # small, static K
        o_ref[k, :, :] = jnp.exp(sdist * coeff_ref[k]
                                 + logs2_ref[k]).astype(o_ref.dtype)


def _rbf_gridk_body(coeff_ref, logs2_ref, x_ref, yT_ref, o_ref, sdist_ref):
    """Grid step (i, j, k): k innermost, sdist cached in VMEM scratch."""
    k = pl.program_id(2)

    @pl.when(k == 0)
    def _():
        sdist_ref[...] = _sdist_tile(x_ref[...], yT_ref[...])

    o_ref[...] = jnp.exp(sdist_ref[...] * coeff_ref[k]
                         + logs2_ref[k]).astype(o_ref.dtype)


def rbf_kernel_forward(scale, lengthscale, locations1, locations2,
                       *, tm=None, tn=None, out_dtype=jnp.float32):
    """Pallas implementation of RBFKernel.forward for 2-D location inputs."""
    K = scale.shape[0]
    N1, D = locations1.shape
    N2, D2 = locations2.shape
    assert D == D2

    x = locations1.astype(jnp.float32)                       # (N1, D)
    yT = locations2.astype(jnp.float32).T                    # (D, N2): N2 on lanes

    # Per-latent scalars precomputed once; scale folded into the exponent.
    scale = scale.astype(jnp.float32)
    lengthscale = lengthscale.astype(jnp.float32)
    coeff = -0.5 / (lengthscale * lengthscale)               # (K,)
    logs2 = jnp.log(scale * scale)                           # (K,)

    fuse_k = K <= 8

    # Tile sizes: sublane-aligned tm, lane-dense tn (multiple of 128),
    # budgeted so double-buffered output (+ scratch) stays well under 32 MiB.
    if tm is None:
        tm = min(256 if fuse_k else 512, _round_up(N1, 8))
    if tn is None:
        if fuse_k:
            budget = (16 * 1024 * 1024) // (2 * K * tm * 4)
            tn_budget = max(128, (budget // 128) * 128)
            tn = min(2048, _round_up(N2, 128), tn_budget)
        else:
            tn = min(1024, _round_up(N2, 128))

    # Ragged edges handled by Pallas masking -> no padding, no output slice.
    gi = pl.cdiv(N1, tm)
    gj = pl.cdiv(N2, tn)
    swap_ij = gj > gi          # v7x megacore: most-blocks parallel axis first

    if fuse_k:
        if swap_ij:
            grid = (gj, gi)
            x_map = lambda j, i: (i, 0)
            y_map = lambda j, i: (0, j)
            o_map = lambda j, i: (0, i, j)
        else:
            grid = (gi, gj)
            x_map = lambda i, j: (i, 0)
            y_map = lambda i, j: (0, j)
            o_map = lambda i, j: (0, i, j)
        body = _rbf_fused_body
        out_block = (K, tm, tn)
        scratch = []
        sem = ("parallel", "parallel")
    else:
        if swap_ij:
            grid = (gj, gi, K)
            x_map = lambda j, i, k: (i, 0)
            y_map = lambda j, i, k: (0, j)
            o_map = lambda j, i, k: (k, i, j)
        else:
            grid = (gi, gj, K)
            x_map = lambda i, j, k: (i, 0)
            y_map = lambda i, j, k: (0, j)
            o_map = lambda i, j, k: (k, i, j)
        body = _rbf_gridk_body
        out_block = (pl.Squeezed(), tm, tn)
        scratch = [pltpu.VMEM((tm, tn), jnp.float32)]        # cached sdist
        sem = ("parallel", "parallel", "arbitrary")

    out_bytes = jnp.dtype(out_dtype).itemsize
    cost = pl.CostEstimate(
        flops=2 * N1 * N2 * (D + 1) + 2 * K * N1 * N2,
        transcendentals=K * N1 * N2,
        bytes_accessed=(out_bytes * K * N1 * N2
                        + 4 * (N1 * D + N2 * D + 2 * K)),
    )

    out = pl.pallas_call(
        body,
        out_shape=jax.ShapeDtypeStruct((K, N1, N2), out_dtype),
        grid=grid,
        in_specs=[
            # per-latent scalars live whole in SMEM
            pl.BlockSpec(memory_space=pltpu.MemorySpace.SMEM),   # coeff  (K,)
            pl.BlockSpec(memory_space=pltpu.MemorySpace.SMEM),   # logs2  (K,)
            # location tiles (k-independent block index -> no redundant DMA)
            pl.BlockSpec((tm, D), x_map),                        # x  (N1, D)
            pl.BlockSpec((D, tn), y_map),                        # yT (D, N2)
        ],
        out_specs=pl.BlockSpec(out_block, o_map),
        scratch_shapes=scratch,
        compiler_params=pltpu.CompilerParams(
            dimension_semantics=sem,
            vmem_limit_bytes=32 * 1024 * 1024),
        cost_estimate=cost,
    )(coeff, logs2, x, yT)

    return out


def rbf_reference(scale, lengthscale, locations1, locations2):
    """Pure-JAX reference mirroring the torch module exactly."""
    diff = locations1[..., :, None, :] - locations2[..., None, :, :]
    sdist = jnp.sum(diff * diff, axis=-1)[None]                   # (1, N1, N2)
    s2 = (scale ** 2)[:, None, None]
    l2 = (lengthscale ** 2)[:, None, None]
    return s2 * jnp.exp(-0.5 * sdist / l2)


if __name__ == "__main__":
    key = jax.random.PRNGKey(0)
    k1, k2, k3, k4 = jax.random.split(key, 4)

    # --- Test 1: small shapes matching the module; exercises the K-fused path.
    K, D, N1, N2 = 4, 3, 16, 12
    scale = jnp.array([1.0, 0.5, 2.0, 1.5], dtype=jnp.float32)        # (K,)
    lengthscale = jnp.array([0.5, 1.0, 1.5, 2.0], dtype=jnp.float32)  # (K,)
    locations1 = jax.random.normal(k1, (N1, D), dtype=jnp.float32)
    locations2 = jax.random.normal(k2, (N2, D), dtype=jnp.float32)

    out = jax.block_until_ready(
        rbf_kernel_forward(scale, lengthscale, locations1, locations2))
    ref = rbf_reference(scale, lengthscale, locations1, locations2)
    assert out.shape == (K, N1, N2)
    assert jnp.allclose(out, ref, rtol=1e-4, atol=1e-5), "mismatch (fused-K path)"

    # --- Test 2: K > 8 -> grid-K path, ragged (non-tile-aligned) N1/N2.
    K2, D2, M1, M2 = 9, 5, 50, 37
    scale2 = jnp.linspace(0.5, 2.0, K2, dtype=jnp.float32)
    ls2 = jnp.linspace(0.5, 2.5, K2, dtype=jnp.float32)
    locA = jax.random.normal(k3, (M1, D2), dtype=jnp.float32)
    locB = jax.random.normal(k4, (M2, D2), dtype=jnp.float32)

    out2 = jax.block_until_ready(rbf_kernel_forward(scale2, ls2, locA, locB))
    ref2 = rbf_reference(scale2, ls2, locA, locB)
    assert out2.shape == (K2, M1, M2)
    assert jnp.allclose(out2, ref2, rtol=1e-4, atol=1e-6), "mismatch (grid-K path)"

    # TODO(synk): Kernel.posteriors uses torch.linalg.inv; matrix inversion has
    # no clean Pallas equivalent and is out of scope for the forward pass.
    print("KERNEL_OK")
</pallas_src>

<mosaic_0001>
module attributes {stable_mosaic.version = 11 : i64} {
  func.func @_rbf_fused_body(%arg0: i32, %arg1: i32, %arg2: memref<4xf32, #tpu.memory_space<smem>>, %arg3: memref<4xf32, #tpu.memory_space<smem>>, %arg4: memref<16x3xf32, #tpu.memory_space<vmem>>, %arg5: memref<3x128xf32, #tpu.memory_space<vmem>>, %arg6: memref<4x16x128xf32, #tpu.memory_space<vmem>>) attributes {dimension_semantics = [#tpu.dimension_semantics<parallel>, #tpu.dimension_semantics<parallel>], iteration_bounds = array<i64: 1, 1>, scalar_prefetch = 0 : i64, scratch_operands = 0 : i64, tpu.core_type = #tpu.core_type<tc>, window_params = [{transform_indices = @transform_0, window_bounds = array<i64: 4>}, {transform_indices = @transform_1, window_bounds = array<i64: 4>}, {transform_indices = @transform_2, window_bounds = array<i64: 16, 3>}, {transform_indices = @transform_3, window_bounds = array<i64: 3, 128>}, {transform_indices = @transform_4, window_bounds = array<i64: 4, 16, 128>}]} {
    %c0 = arith.constant 0 : index
    %c0_0 = arith.constant 0 : index
    %0 = vector.load %arg4[%c0, %c0_0] : memref<16x3xf32, #tpu.memory_space<vmem>>, vector<16x3xf32>
    %c0_1 = arith.constant 0 : index
    %c0_2 = arith.constant 0 : index
    %1 = vector.load %arg5[%c0_1, %c0_2] : memref<3x128xf32, #tpu.memory_space<vmem>>, vector<3x128xf32>
    %2 = arith.mulf %0, %0 : vector<16x3xf32>
    %cst = arith.constant dense<0.000000e+00> : vector<16xf32>
    %3 = vector.multi_reduction <add>, %2, %cst [1] : vector<16x3xf32> to vector<16xf32>
    %4 = vector.shape_cast %3 : vector<16xf32> to vector<16x1xf32>
    %5 = arith.mulf %1, %1 : vector<3x128xf32>
    %cst_3 = arith.constant dense<0.000000e+00> : vector<128xf32>
    %6 = vector.multi_reduction <add>, %5, %cst_3 [0] : vector<3x128xf32> to vector<128xf32>
    %7 = vector.shape_cast %6 : vector<128xf32> to vector<1x128xf32>
    %8 = vector.broadcast %4 : vector<16x1xf32> to vector<16x128xf32>
    %9 = vector.broadcast %7 : vector<1x128xf32> to vector<16x128xf32>
    %10 = arith.addf %8, %9 : vector<16x128xf32>
    %cst_4 = arith.constant dense<0.000000e+00> : vector<16x128xf32>
    %11 = tpu.matmul %0, %1, %cst_4 {dimension_numbers = #tpu.dot_dimension_numbers<[1], [0], [0], [1], [0, 0, 1, 1], [], []>} : vector<16x3xf32>, vector<3x128xf32>, vector<16x128xf32> -> vector<16x128xf32>
    %cst_5 = arith.constant 2.000000e+00 : f32
    %12 = vector.broadcast %cst_5 : f32 to vector<16x128xf32>
    %13 = arith.mulf %12, %11 : vector<16x128xf32>
    %14 = arith.subf %10, %13 : vector<16x128xf32>
    %cst_6 = arith.constant 0.000000e+00 : f32
    %15 = vector.broadcast %cst_6 : f32 to vector<16x128xf32>
    %16 = arith.maximumf %14, %15 : vector<16x128xf32>
    %c0_7 = arith.constant 0 : index
    %17 = memref.load %arg2[%c0_7] : memref<4xf32, #tpu.memory_space<smem>>
    %18 = vector.broadcast %17 : f32 to vector<16x128xf32>
    %19 = arith.mulf %16, %18 : vector<16x128xf32>
    %c0_8 = arith.constant 0 : index
    %20 = memref.load %arg3[%c0_8] : memref<4xf32, #tpu.memory_space<smem>>
    %21 = vector.broadcast %20 : f32 to vector<16x128xf32>
    %22 = arith.addf %19, %21 : vector<16x128xf32>
    %23 = math.exp %22 : vector<16x128xf32>
    %c0_9 = arith.constant 0 : index
    %c0_10 = arith.constant 0 : index
    %c0_11 = arith.constant 0 : index
    %24 = vector.load %arg6[%c0_9, %c0_10, %c0_11] : memref<4x16x128xf32, #tpu.memory_space<vmem>>, vector<1x16x128xf32>
    %25 = vector.shape_cast %24 : vector<1x16x128xf32> to vector<16x128xf32>
    %26 = vector.shape_cast %23 : vector<16x128xf32> to vector<1x16x128xf32>
    tpu.vector_store %arg6[%c0_9, %c0_10, %c0_11], %26 {strides = array<i32>} : memref<4x16x128xf32, #tpu.memory_space<vmem>>, vector<1x16x128xf32>,
    %c1 = arith.constant 1 : index
    %27 = memref.load %arg2[%c1] : memref<4xf32, #tpu.memory_space<smem>>
    %28 = vector.broadcast %27 : f32 to vector<16x128xf32>
    %29 = arith.mulf %16, %28 : vector<16x128xf32>
    %c1_12 = arith.constant 1 : index
    %30 = memref.load %arg3[%c1_12] : memref<4xf32, #tpu.memory_space<smem>>
    %31 = vector.broadcast %30 : f32 to vector<16x128xf32>
    %32 = arith.addf %29, %31 : vector<16x128xf32>
    %33 = math.exp %32 : vector<16x128xf32>
    %c1_13 = arith.constant 1 : index
    %c0_14 = arith.constant 0 : index
    %c0_15 = arith.constant 0 : index
    %34 = vector.load %arg6[%c1_13, %c0_14, %c0_15] : memref<4x16x128xf32, #tpu.memory_space<vmem>>, vector<1x16x128xf32>
    %35 = vector.shape_cast %34 : vector<1x16x128xf32> to vector<16x128xf32>
    %36 = vector.shape_cast %33 : vector<16x128xf32> to vector<1x16x128xf32>
    tpu.vector_store %arg6[%c1_13, %c0_14, %c0_15], %36 {strides = array<i32>} : memref<4x16x128xf32, #tpu.memory_space<vmem>>, vector<1x16x128xf32>,
    %c2 = arith.constant 2 : index
    %37 = memref.load %arg2[%c2] : memref<4xf32, #tpu.memory_space<smem>>
    %38 = vector.broadcast %37 : f32 to vector<16x128xf32>
    %39 = arith.mulf %16, %38 : vector<16x128xf32>
    %c2_16 = arith.constant 2 : index
    %40 = memref.load %arg3[%c2_16] : memref<4xf32, #tpu.memory_space<smem>>
    %41 = vector.broadcast %40 : f32 to vector<16x128xf32>
    %42 = arith.addf %39, %41 : vector<16x128xf32>
    %43 = math.exp %42 : vector<16x128xf32>
    %c2_17 = arith.constant 2 : index
    %c0_18 = arith.constant 0 : index
    %c0_19 = arith.constant 0 : index
    %44 = vector.load %arg6[%c2_17, %c0_18, %c0_19] : memref<4x16x128xf32, #tpu.memory_space<vmem>>, vector<1x16x128xf32>
    %45 = vector.shape_cast %44 : vector<1x16x128xf32> to vector<16x128xf32>
    %46 = vector.shape_cast %43 : vector<16x128xf32> to vector<1x16x128xf32>
    tpu.vector_store %arg6[%c2_17, %c0_18, %c0_19], %46 {strides = array<i32>} : memref<4x16x128xf32, #tpu.memory_space<vmem>>, vector<1x16x128xf32>,
    %c3 = arith.constant 3 : index
    %47 = memref.load %arg2[%c3] : memref<4xf32, #tpu.memory_space<smem>>
    %48 = vector.broadcast %47 : f32 to vector<16x128xf32>
    %49 = arith.mulf %16, %48 : vector<16x128xf32>
    %c3_20 = arith.constant 3 : index
    %50 = memref.load %arg3[%c3_20] : memref<4xf32, #tpu.memory_space<smem>>
    %51 = vector.broadcast %50 : f32 to vector<16x128xf32>
    %52 = arith.addf %49, %51 : vector<16x128xf32>
    %53 = math.exp %52 : vector<16x128xf32>
    %c3_21 = arith.constant 3 : index
    %c0_22 = arith.constant 0 : index
    %c0_23 = arith.constant 0 : index
    %54 = vector.load %arg6[%c3_21, %c0_22, %c0_23] : memref<4x16x128xf32, #tpu.memory_space<vmem>>, vector<1x16x128xf32>
    %55 = vector.shape_cast %54 : vector<1x16x128xf32> to vector<16x128xf32>
    %56 = vector.shape_cast %53 : vector<16x128xf32> to vector<1x16x128xf32>
    tpu.vector_store %arg6[%c3_21, %c0_22, %c0_23], %56 {strides = array<i32>} : memref<4x16x128xf32, #tpu.memory_space<vmem>>, vector<1x16x128xf32>,
    return
  }
  func.func @transform_0(%arg0: i32, %arg1: i32) -> i32 {
    %c0_i32 = arith.constant 0 : i32
    %c0_i32_0 = arith.constant 0 : i32
    return %c0_i32 : i32
  }
  func.func @transform_1(%arg0: i32, %arg1: i32) -> i32 {
    %c0_i32 = arith.constant 0 : i32
    %c0_i32_0 = arith.constant 0 : i32
    return %c0_i32 : i32
  }
  func.func @transform_2(%arg0: i32, %arg1: i32) -> (i32, i32) {
    %c0_i32 = arith.constant 0 : i32
    %c0_i32_0 = arith.constant 0 : i32
    return %arg0, %c0_i32 : i32, i32
  }
  func.func @transform_3(%arg0: i32, %arg1: i32) -> (i32, i32) {
    %c0_i32 = arith.constant 0 : i32
    %c0_i32_0 = arith.constant 0 : i32
    return %c0_i32, %arg1 : i32, i32
  }
  func.func @transform_4(%arg0: i32, %arg1: i32) -> (i32, i32, i32) {
    %c0_i32 = arith.constant 0 : i32
    %c0_i32_0 = arith.constant 0 : i32
    return %c0_i32, %arg0, %arg1 : i32, i32, i32
  }
}

</mosaic_0001>

<bundles_post_ra>
// kernel: tpu_custom_call.1
= control target key start
LH: loop header
LB: loop body
LE: loop exit
PB: predicated region body
PF: predicated region fallthrough
CT: control target
= control target key end

     0   :  { %9 = vsyncpa [#allocation3], 0  ;;  %s379_s0 = inlined_call_operand.vmem [shape: f32[4], index: 0, kind: input, shape index: {}]   ;;  %s380_s1 = inlined_call_operand.vmem [shape: f32[4], index: 1, kind: input, shape index: {}]   ;;  %s381_s2 = inlined_call_operand.vmem [shape: f32[16,3], index: 2, kind: input, shape index: {}]   ;;  %s382_s3 = inlined_call_operand.vmem [shape: f32[3,12], index: 3, kind: input, shape index: {}]   ;;  %s383_s4 = inlined_call_operand.vmem [shape: f32[4,16,12], index: 4, kind: output, shape index: {}]  }
   0x1   :  { %s17_s17 = sshll.u32 %s379_s0, 4  ;;  %s18_s17 = int_to_ptr.vmem [resolvable:$true] %s17_s17 }
   0x2   :  { %10 = vsyncpa [#allocation5], 0  ;;  %s27_s20 = sshll.u32 %s380_s1, 4  ;;  %s261_s21 = scalar_lea.vmem %s18_s17, 16  ;;  %s28_s20 = int_to_ptr.vmem [resolvable:$true] %s27_s20 }
   0x3   :  { %p262_p0 = scmp.ne.s32.totalorder %s18_s17, %s261_s21  ;;  %p266_p1 = scmp.lt.s32.totalorder %s18_s17, %s18_s17 }
   0x4   :  { %p267_p2 = scmp.lt.s32.totalorder %s261_s21, %s261_s21 }
   0x6   :  { %p268_p3 = por %p267_p2, %p266_p1 }
   0x8   :  { %p269_p4 = pnand %p268_p3, %p262_p0 }
   0xa   :  { %272 = shalt.err (!%p269_p4)
}
   0xb   :  { %s289_s22 = smov [#allocation2]   ;;  %s273_s23 = scalar_lea.vmem %s28_s20, 16 }
   0xc   :  { %20 = dma.vmem_to_smem %s18_s17, 16, %s289_s22, [#allocation3]  }
   0xd   :  { %p274_p5 = scmp.ne.s32.totalorder %s28_s20, %s273_s23  ;;  %p278_p6 = scmp.lt.s32.totalorder %s28_s20, %s28_s20 }
   0xe   :  { %p279_p7 = scmp.lt.s32.totalorder %s273_s23, %s273_s23 }
  0x10   :  { %p280_p8 = por %p279_p7, %p278_p6 }
  0x12   :  { %p281_p9 = pnand %p280_p8, %p274_p5 }
  0x14   :  { %284 = shalt.err (!%p281_p9)
}
  0x15   :  { %s290_s0 = smov [#allocation4]  }
  0x16   :  { %30 = dma.vmem_to_smem %s28_s20, 16, %s290_s0, [#allocation5]  }
  0x17   :  { %285 = dma.done.wait [#allocation3], 16  }
  0x18   :  { %286 = vsyncadd [#allocation3], 4294967280 }
  0x19   :  { %287 = dma.done.wait [#allocation5], 16  }
  0x1a   :  { %288 = vsyncadd [#allocation5], 4294967280 }
  0x1b   :  { %41 = sfence }
  0x1c   :  { %v44_v0 = vld [vmem:[%s382_s3] sm:$0x7]  ;;  %vm55_vm0 = vcmask 1042432   ;;  %vm47_vm1 = vcmask 23552   ;;  %v43_v2 = vld [vmem:[%s381_s2 + $0x8] sm:$0xff]  ;;  %s331_s3 = sld [smem:[#allocation2]] }
  0x1d   :  { %v42_v1 = vld [vmem:[%s381_s2] sm:$0xff]  ;;  %v54_v3 = vmul.f32 %v44_v0, %v44_v0  ;;  %238 = vmatprep.subr.msk.mxu0 %vm55_vm0, %v44_v0  ;;  %v46_v5 = vmul.f32 %v43_v2, %v43_v2  ;;  %s333_s2 = sld [smem:[#allocation2 + $0x1]]  ;;  %s335_s29 = sld [smem:[#allocation2 + $0x2]] }
  0x1e   :  { %v45_v4 = vmul.f32 %v42_v1, %v42_v1  ;;  %240 = vmatprep.mubr.msk.f32.mxu0 %vm47_vm1, %v42_v1  ;;  %239 = vmatpush3.msk.msra.mxu0 %vm55_vm0, %v44_v0  ;;  %s337_s30 = sld [smem:[#allocation2 + $0x3]]  ;;  %s339_s5 = sld [smem:[#allocation4]] }
  0x1f   :  { %v56_v6 = vsel %vm55_vm0, %v54_v3, 0.0  ;;  %241 = vmatmul.mubr.msk.f32.vlgmr.msra.gmra.mrb[0].mxu0 %vm47_vm1, %v43_v2  ;;  %v51_v8 = vsel %vm47_vm1, %v46_v5, 0.0  ;;  %s341_s6 = sld [smem:[#allocation4 + $0x1]]  ;;  %s343_s7 = sld [smem:[#allocation4 + $0x2]] }
  0x20   :  { %v48_v7 = vsel %vm47_vm1, %v45_v4, 0.0  ;;  %v57_v9 = vrot.slane %v56_v6, 4  ;;  %s345_s8 = sld [smem:[#allocation4 + $0x3]] }
  0x21   :  { %49 = vadd.xlane.f32.xlu0 %v48_v7 }
  0x22   :  { %v58_v10 = vadd.f32 %v57_v9, %v56_v6  ;;  %v156_v23 = vstv %s331_s3 }
  0x23   :  { %v170_v25 = vstv %s333_s2  ;;  %v185_v26 = vstv %s335_s29 }
  0x24   :  { %v59_v11 = vrot.slane %v58_v10, 2  ;;  %v200_v27 = vstv %s337_s30  ;;  %v160_v29 = vstv %s339_s5 }
  0x25   :  { %52 = vadd.xlane.f32.xlu0 %v51_v8  ;;  %v174_v31 = vstv %s341_s6  ;;  %v189_v32 = vstv %s343_s7 }
  0x26   :  { %v60_v12 = vadd.f32 %v59_v11, %v58_v10  ;;  %v204_v33 = vstv %s345_s8 }
  0x28   :  { %v61_v14 = vrot.slane %v60_v12, 1 }
  0x2a   :  { %v62_v16 = vadd.f32 %v61_v14, %v60_v12 }
  0xae   :  { %v50_v13 = vpop.xlane.xlu0 %49 }
  0xaf   :  { %v63_v21 = vadd.f32 %v62_v16, %v50_v13 }
  0xb2   :  { %v53_v15 = vpop.xlane.xlu0 %52 }
  0xb3   :  { %v64_v17 = vadd.f32 %v62_v16, %v53_v15 }
  0xf2   :  { %v242_v18 = vpop.f32.mrb[0].mxu0 }
  0xf3   :  { %v150_v19 = vmul.f32 2.0, %v242_v18  ;;  %v140_v20 = vpop.f32.mrb[1].mxu0 }
  0xf4   :  { %v149_v22 = vmul.f32 2.0, %v140_v20 }
  0xf5   :  { %v152_v24 = vsub.f32 %v64_v17, %v150_v19 }
  0xf6   :  { %v151_v28 = vsub.f32 %v63_v21, %v149_v22 }
  0xf7   :  { %v154_v30 = vmax.f32 %v152_v24, 0.0 }
  0xf8   :  { %v153_v34 = vmax.f32 %v151_v28, 0.0 }
  0xf9   :  { %v158_v35 = vmul.f32 %v156_v23, %v154_v30  ;;  %v172_v36 = vmul.f32 %v170_v25, %v154_v30  ;;  %v187_v37 = vmul.f32 %v185_v26, %v154_v30  ;;  %v202_v38 = vmul.f32 %v200_v27, %v154_v30 }
  0xfa   :  { %v157_v39 = vmul.f32 %v156_v23, %v153_v34  ;;  %v171_v40 = vmul.f32 %v170_v25, %v153_v34  ;;  %v186_v41 = vmul.f32 %v185_v26, %v153_v34  ;;  %v201_v42 = vmul.f32 %v200_v27, %v153_v34 }
  0xfb   :  { %v162_v43 = vadd.f32 %v160_v29, %v158_v35  ;;  %v176_v44 = vadd.f32 %v174_v31, %v172_v36  ;;  %v191_v45 = vadd.f32 %v189_v32, %v187_v37  ;;  %v206_v46 = vadd.f32 %v204_v33, %v202_v38 }
  0xfc   :  { %v161_v47 = vadd.f32 %v160_v29, %v157_v39  ;;  %v175_v48 = vadd.f32 %v174_v31, %v171_v40  ;;  %v190_v52 = vadd.f32 %v189_v32, %v186_v41  ;;  %v205_v54 = vadd.f32 %v204_v33, %v201_v42 }
  0xfd   :  { %v165_v49 = vmul.f32 1.442695, %v162_v43  ;;  %v179_v50 = vmul.f32 1.442695, %v176_v44  ;;  %v194_v51 = vmul.f32 1.442695, %v191_v45 }
  0xfe   :  { %v209_v53 = vmul.f32 1.442695, %v206_v46  ;;  %v163_v55 = vmul.f32 1.442695, %v161_v47  ;;  %v177_v56 = vmul.f32 1.442695, %v175_v48 }
  0xff   :  { %245 = vpow2.f32 %v165_v49  ;;  %v192_v57 = vmul.f32 1.442695, %v190_v52  ;;  %v207_v58 = vmul.f32 1.442695, %v205_v54 }
 0x100   :  { %247 = vpow2.f32 %v179_v50 }
 0x101   :  { %249 = vpow2.f32 %v194_v51 }
 0x102   :  { %251 = vpow2.f32 %v209_v53 }
 0x103   :  { %253 = vpow2.f32 %v163_v55 }
 0x104   :  { %255 = vpow2.f32 %v177_v56 }
 0x105   :  { %257 = vpow2.f32 %v192_v57 }
 0x106   :  { %259 = vpow2.f32 %v207_v58 }
 0x109   :  { %v246_v59 = vpop.eup %245 }
 0x10a   :  { %v248_v60 = vpop.eup %247  ;;  %168 = vst [vmem:[%s383_s4 + $0x8] sm:$0xff] %v246_v59 }
 0x10b   :  { %v250_v61 = vpop.eup %249  ;;  %226 = vst [vmem:[%s383_s4 + $0x18] sm:$0xff] %v248_v60 }
 0x10c   :  { %v252_v62 = vpop.eup %251  ;;  %230 = vst [vmem:[%s383_s4 + $0x28] sm:$0xff] %v250_v61 }
 0x10d   :  { %v254_v63 = vpop.eup %253  ;;  %234 = vst [vmem:[%s383_s4 + $0x38] sm:$0xff] %v252_v62 }
 0x10e   :  { %v256_v0 = vpop.eup %255  ;;  %167 = vst [vmem:[%s383_s4] sm:$0xff] %v254_v63 }
 0x10f   :  { %v258_v1 = vpop.eup %257  ;;  %225 = vst [vmem:[%s383_s4 + $0x10] sm:$0xff] %v256_v0 }
 0x110   :  { %v260_v2 = vpop.eup %259  ;;  %229 = vst [vmem:[%s383_s4 + $0x20] sm:$0xff] %v258_v1 }
 0x111   :  { %233 = vst [vmem:[%s383_s4 + $0x30] sm:$0xff] %v260_v2 }
 0x112   :  { %218 = vsyncpa [#allocation3], 1 }
 0x113   :  { %219 = vsyncpa [#allocation5], 1 }

</bundles_post_ra>
